<compile_context>
chip_gen: v6e
topology: v6e:2x2x1
jax: 0.10.0
libtpu: 0.0.40
codegen_flags: <defaults>
</compile_context>

<pallas_src>
import functools

import jax
import jax.numpy as jnp
from jax.experimental import pallas as pl
from jax.experimental.pallas import tpu as pltpu

_LANE = 128
_SMALL_NP = 512                      # fully fused single-step path below this
_VMEM_TILE_BUDGET = 40 * 1024 * 1024
_Z_RESIDENT_LIMIT = 8 * 1024 * 1024


def _round_up(x, m):
    return ((x + m - 1) // m) * m


def _choose_tiles(np_, zh, out_cols, z_resident):
    """Largest (tm, tk) dividing np_ that fits the VMEM budget (v7x-safe)."""
    for tm in (1024, 512, 256, 128):
        if np_ % tm:
            continue
        for tk in (2048, 1024, 512, 256, 128):
            if np_ % tk:
                continue
            vmem = 2 * tm * tk * 4                 # adj f32 tiles, double-buffered
            vmem += tm * zh * 4                    # f32 accumulator scratch
            vmem += 2 * tm * out_cols * 4          # output tiles (worst case f32)
            vmem += zh * out_cols * 2              # resident W2 (bf16)
            vmem += np_ * zh * 2 if z_resident else 2 * tk * zh * 2
            if vmem <= _VMEM_TILE_BUDGET:
                return tm, tk
    return 128, 128


# ---------------------------------------------------------------------------
# Tiled path (large graphs): two adj passes, W2 fused into pass-1 epilogue.
# ---------------------------------------------------------------------------
def _pass1_kernel(adj_ref, z1_ref, b1_ref, w2_ref, z2_ref, acc_ref, *, tk, z_resident):
    """One (row-tile i, k-tile) step of z2 = relu(adj @ z1 + b1) @ W2."""
    k = pl.program_id(1)

    @pl.when(k == 0)
    def _init():
        acc_ref[...] = jnp.zeros_like(acc_ref)

    a = adj_ref[...].astype(jnp.bfloat16)          # in-kernel cast, hides under DMA
    if z_resident:
        off = pl.multiple_of(k * tk, tk)
        z = z1_ref[pl.ds(off, tk), :]
    else:
        z = z1_ref[...]
    acc_ref[...] += jnp.dot(a, z, preferred_element_type=jnp.float32)

    @pl.when(k == pl.num_programs(1) - 1)
    def _finalize():
        h = jnp.maximum(acc_ref[...] + b1_ref[...], 0.0).astype(jnp.bfloat16)
        z2_ref[...] = jnp.dot(
            h, w2_ref[...], preferred_element_type=jnp.float32
        ).astype(z2_ref.dtype)


def _pass2_kernel(adj_ref, z2_ref, b2_ref, out_ref, acc_ref, *, tk, z_resident):
    """One (row-tile i, k-tile) step of prob = softmax(adj @ z2 + b2, axis=1)."""
    k = pl.program_id(1)

    @pl.when(k == 0)
    def _init():
        acc_ref[...] = jnp.zeros_like(acc_ref)

    a = adj_ref[...].astype(jnp.bfloat16)
    if z_resident:
        off = pl.multiple_of(k * tk, tk)
        z = z2_ref[pl.ds(off, tk), :]
    else:
        z = z2_ref[...]
    acc_ref[...] += jnp.dot(a, z, preferred_element_type=jnp.float32)

    @pl.when(k == pl.num_programs(1) - 1)
    def _finalize():
        x = acc_ref[...] + b2_ref[...]             # padded classes carry -1e30
        m = jnp.max(x, axis=1, keepdims=True)
        e = jnp.exp(x - m)
        s = jnp.sum(e, axis=1, keepdims=True)
        out_ref[...] = (e / s).astype(out_ref.dtype)   # exact divide (epilogue only)


def _run_adj_pass(kernel_body, adj, z, bias, out_cols, out_dtype, w2=None):
    """act(adj @ z + bias) [@ w2] with adj f32 (cast in-kernel) and resident Z."""
    np_ = adj.shape[0]
    zh = z.shape[1]
    z_resident = np_ * zh * 2 <= _Z_RESIDENT_LIMIT
    tm, tk = _choose_tiles(np_, zh, out_cols, z_resident)

    kernel = functools.partial(kernel_body, tk=tk, z_resident=z_resident)

    in_specs = [
        pl.BlockSpec((tm, tk), lambda i, k: (i, k)),               # adj tile (f32)
        (pl.BlockSpec((np_, zh), lambda i, k: (0, 0)) if z_resident
         else pl.BlockSpec((tk, zh), lambda i, k: (k, 0))),        # Z resident/streamed
        pl.BlockSpec((1, zh), lambda i, k: (0, 0)),                # bias (tiny)
    ]
    args = [adj, z, bias]
    if w2 is not None:
        in_specs.append(pl.BlockSpec((zh, out_cols), lambda i, k: (0, 0)))  # W2 (32 KiB)
        args.append(w2)

    return pl.pallas_call(
        kernel,
        out_shape=jax.ShapeDtypeStruct((np_, out_cols), out_dtype),
        grid_spec=pltpu.PrefetchScalarGridSpec(
            num_scalar_prefetch=0,
            grid=(np_ // tm, np_ // tk),
            in_specs=in_specs,
            out_specs=pl.BlockSpec((tm, out_cols), lambda i, k: (i, 0)),
            scratch_shapes=[pltpu.VMEM((tm, zh), jnp.float32)],
        ),
        compiler_params=pltpu.CompilerParams(
            # row axis "parallel": independent row tiles (also shards across the
            # 2 TensorCores on v7x); k reduction axis stays "arbitrary".
            dimension_semantics=("parallel", "arbitrary"),
            vmem_limit_bytes=48 * 1024 * 1024,
        ),
    )(*args)


def _gcn_tiled(feat, adj, w1, b1, w2, b2):
    n, f = feat.shape
    hid = w1.shape[1]
    nc = w2.shape[1]
    np_ = _round_up(n, _LANE)
    hpad = _round_up(hid, _LANE)
    cpad = _round_up(nc, _LANE)

    # adj stays f32 and is cast to bf16 in-kernel -> no separate full-HBM cast pass.
    adj_f32 = adj.astype(jnp.float32)
    if np_ != n:
        adj_p = jnp.zeros((np_, np_), jnp.float32).at[:n, :n].set(adj_f32)
    else:
        adj_p = adj_f32

    feat_p = jnp.zeros((np_, f), jnp.bfloat16).at[:n, :].set(feat.astype(jnp.bfloat16))
    w1_p = jnp.zeros((f, hpad), jnp.bfloat16).at[:, :hid].set(w1.astype(jnp.bfloat16))
    b1_p = jnp.zeros((1, hpad), jnp.float32).at[:, :hid].set(b1.astype(jnp.float32))
    w2_p = (
        jnp.zeros((hpad, cpad), jnp.bfloat16)
        .at[:hid, :nc]
        .set(w2.astype(jnp.bfloat16))
    )
    # -1e30 in padded class columns => exp() == 0 under the in-kernel softmax.
    b2_p = jnp.full((1, cpad), -1e30, jnp.float32).at[:, :nc].set(b2.astype(jnp.float32))

    # Tall-skinny feature matmul stays in XLA (cheap); bf16 MXU input for pass 1.
    z1 = jnp.dot(feat_p, w1_p, preferred_element_type=jnp.float32).astype(jnp.bfloat16)

    # Pass 1: z2 = relu(adj @ z1 + b1) @ W2   (W2 fused into the epilogue).
    z2 = _run_adj_pass(_pass1_kernel, adj_p, z1, b1_p, cpad, jnp.bfloat16, w2=w2_p)
    # TODO(synk): F.dropout skipped — inference mode (training=False) makes it identity.
    # Pass 2: prob = softmax(adj @ z2 + b2) over the padded-class lanes.
    prob_p = _run_adj_pass(_pass2_kernel, adj_p, z2, b2_p, cpad, jnp.float32)
    return prob_p[:n, :nc]


# ---------------------------------------------------------------------------
# Fully fused single-step path (small graphs: the module's native shapes).
# ---------------------------------------------------------------------------
def _fused_small_kernel(feat_ref, adj_ref, w1_ref, b1_ref, w2_ref, b2_ref, out_ref):
    adj = adj_ref[...]
    z1 = jnp.dot(feat_ref[...], w1_ref[...], preferred_element_type=jnp.float32)
    h1 = jnp.maximum(
        jnp.dot(adj, z1, preferred_element_type=jnp.float32) + b1_ref[...], 0.0
    )
    z2 = jnp.dot(h1, w2_ref[...], preferred_element_type=jnp.float32)
    logits = jnp.dot(adj, z2, preferred_element_type=jnp.float32) + b2_ref[...]
    m = jnp.max(logits, axis=1, keepdims=True)
    e = jnp.exp(logits - m)
    s = jnp.sum(e, axis=1, keepdims=True)
    out_ref[...] = e / s


def _gcn_small(feat, adj, w1, b1, w2, b2):
    n, f = feat.shape
    hid = w1.shape[1]
    nc = w2.shape[1]
    np_ = _round_up(n, _LANE)
    fpad = _round_up(f, _LANE)
    hpad = _round_up(hid, _LANE)
    cpad = _round_up(nc, _LANE)

    adj_p = jnp.zeros((np_, np_), jnp.float32).at[:n, :n].set(adj.astype(jnp.float32))
    feat_p = jnp.zeros((np_, fpad), jnp.float32).at[:n, :f].set(feat.astype(jnp.float32))
    w1_p = jnp.zeros((fpad, hpad), jnp.float32).at[:f, :hid].set(w1.astype(jnp.float32))
    b1_p = jnp.zeros((1, hpad), jnp.float32).at[:, :hid].set(b1.astype(jnp.float32))
    w2_p = jnp.zeros((hpad, cpad), jnp.float32).at[:hid, :nc].set(w2.astype(jnp.float32))
    b2_p = jnp.full((1, cpad), -1e30, jnp.float32).at[:, :nc].set(b2.astype(jnp.float32))

    # Single grid point; every operand (< 1 MiB total) lives in VMEM.
    prob_p = pl.pallas_call(
        _fused_small_kernel,
        out_shape=jax.ShapeDtypeStruct((np_, cpad), jnp.float32),
    )(feat_p, adj_p, w1_p, b1_p, w2_p, b2_p)
    return prob_p[:n, :nc]


@jax.jit
def gcn_classification(feat, adj, w1, b1, w2, b2):
    """softmax(adj @ (relu(adj @ (feat@W1) + b1) @ W2) + b2, axis=1)."""
    n = feat.shape[0]
    if _round_up(n, _LANE) <= _SMALL_NP:
        return _gcn_small(feat, adj, w1, b1, w2, b2)
    return _gcn_tiled(feat, adj, w1, b1, w2, b2)


# ---------------------------------------------------------------------------
# Module wrapper (matches Classification(num_feature, cls_hid_1, num_class, ...)).
# ---------------------------------------------------------------------------
def init_encoder_params(key, num_feature, cls_hid_1, num_class):
    """Deterministic weights for one GCN_two encoder (W1, b1, W2, b2)."""
    k1, k2 = jax.random.split(key)
    s1 = 1.0 / jnp.sqrt(jnp.float32(num_feature))
    s2 = 1.0 / jnp.sqrt(jnp.float32(cls_hid_1))
    w1 = jax.random.uniform(k1, (num_feature, cls_hid_1), jnp.float32, -s1, s1)
    b1 = jnp.zeros((1, cls_hid_1), jnp.float32)
    w2 = jax.random.uniform(k2, (cls_hid_1, num_class), jnp.float32, -s2, s2)
    b2 = jnp.zeros((1, num_class), jnp.float32)
    return (w1, b1, w2, b2)


class Classification:
    """JAX/Pallas port of code/module/cls.py::Classification (pyg=False path)."""

    def __init__(self, key, num_feature, cls_hid_1, num_class, dropout=0.0, pyg=False):
        del dropout, pyg  # dropout is identity at inference; pyg path same math here
        kv1, kv2, kv = jax.random.split(key, 3)
        self.params = {
            "v1": init_encoder_params(kv1, num_feature, cls_hid_1, num_class),
            "v2": init_encoder_params(kv2, num_feature, cls_hid_1, num_class),
            "v": init_encoder_params(kv, num_feature, cls_hid_1, num_class),
        }

    def __call__(self, feat, view, flag):
        w1, b1, w2, b2 = self.params[flag]
        return gcn_classification(feat, view, w1, b1, w2, b2)


def _reference(feat, adj, w1, b1, w2, b2):
    h1 = jnp.maximum(adj @ (feat @ w1) + b1, 0.0)
    logits = adj @ (h1 @ w2) + b2
    return jax.nn.softmax(logits, axis=1)


def _make_graph(key, n, num_feature):
    k_feat, k_adj = jax.random.split(key)
    feat = jax.random.normal(k_feat, (n, num_feature), jnp.float32)
    a = (jax.random.uniform(k_adj, (n, n)) > 0.5).astype(jnp.float32)
    a = jnp.maximum(a, a.T) + jnp.eye(n, dtype=jnp.float32)
    adj = a / jnp.sum(a, axis=1, keepdims=True)
    return feat, adj


if __name__ == "__main__":
    # Module-native tiny shapes: N=8 nodes, num_feature=32, cls_hid_1=16, num_class=4.
    N, NUM_FEATURE, CLS_HID_1, NUM_CLASS = 8, 32, 16, 4

    key = jax.random.PRNGKey(0)
    k_graph, k_graph2, k_params = jax.random.split(key, 3)

    feat, adj = _make_graph(k_graph, N, NUM_FEATURE)
    model = Classification(k_params, NUM_FEATURE, CLS_HID_1, NUM_CLASS,
                           dropout=0.5, pyg=False)

    # 1) Fused small-graph kernel (the module's actual regime).
    for flag in ("v1", "v2", "v"):
        prob = model(feat, adj, flag)
        prob = jax.block_until_ready(prob)
        ref = _reference(feat, adj, *model.params[flag])
        assert prob.shape == (N, NUM_CLASS)
        assert jnp.allclose(jnp.sum(prob, axis=1), 1.0, atol=1e-3)
        assert jnp.allclose(prob, ref, atol=1e-2, rtol=1e-2)

    # 2) Tiled large-graph path (bf16 MXU inputs, f32 accumulation).
    N2 = 1024
    feat2, adj2 = _make_graph(k_graph2, N2, NUM_FEATURE)
    w1, b1, w2, b2 = model.params["v"]
    prob2 = jax.block_until_ready(gcn_classification(feat2, adj2, w1, b1, w2, b2))
    ref2 = _reference(feat2, adj2, w1, b1, w2, b2)
    assert prob2.shape == (N2, NUM_CLASS)
    assert jnp.allclose(jnp.sum(prob2, axis=1), 1.0, atol=1e-3)
    assert jnp.allclose(prob2, ref2, atol=2e-2, rtol=2e-2)

    print("KERNEL_OK")
</pallas_src>

<mosaic_0001>
module attributes {stable_mosaic.version = 11 : i64} {
  func.func @_fused_small_kernel(%arg0: memref<128x128xf32, #tpu.memory_space<vmem>>, %arg1: memref<128x128xf32, #tpu.memory_space<vmem>>, %arg2: memref<128x128xf32, #tpu.memory_space<vmem>>, %arg3: memref<1x128xf32, #tpu.memory_space<vmem>>, %arg4: memref<128x128xf32, #tpu.memory_space<vmem>>, %arg5: memref<1x128xf32, #tpu.memory_space<vmem>>, %arg6: memref<128x128xf32, #tpu.memory_space<vmem>>) attributes {dimension_semantics = [], scalar_prefetch = 0 : i64, scratch_operands = 0 : i64, tpu.core_type = #tpu.core_type<tc>} {
    %c0 = arith.constant 0 : index
    %c0_0 = arith.constant 0 : index
    %0 = vector.load %arg1[%c0, %c0_0] : memref<128x128xf32, #tpu.memory_space<vmem>>, vector<128x128xf32>
    %c0_1 = arith.constant 0 : index
    %c0_2 = arith.constant 0 : index
    %1 = vector.load %arg0[%c0_1, %c0_2] : memref<128x128xf32, #tpu.memory_space<vmem>>, vector<128x128xf32>
    %c0_3 = arith.constant 0 : index
    %c0_4 = arith.constant 0 : index
    %2 = vector.load %arg2[%c0_3, %c0_4] : memref<128x128xf32, #tpu.memory_space<vmem>>, vector<128x128xf32>
    %cst = arith.constant dense<0.000000e+00> : vector<128x128xf32>
    %3 = tpu.matmul %1, %2, %cst {dimension_numbers = #tpu.dot_dimension_numbers<[1], [0], [0], [1], [0, 0, 1, 1], [], []>} : vector<128x128xf32>, vector<128x128xf32>, vector<128x128xf32> -> vector<128x128xf32>
    %cst_5 = arith.constant dense<0.000000e+00> : vector<128x128xf32>
    %4 = tpu.matmul %0, %3, %cst_5 {dimension_numbers = #tpu.dot_dimension_numbers<[1], [0], [0], [1], [0, 0, 1, 1], [], []>} : vector<128x128xf32>, vector<128x128xf32>, vector<128x128xf32> -> vector<128x128xf32>
    %c0_6 = arith.constant 0 : index
    %c0_7 = arith.constant 0 : index
    %5 = vector.load %arg3[%c0_6, %c0_7] : memref<1x128xf32, #tpu.memory_space<vmem>>, vector<1x128xf32>
    %6 = vector.broadcast %5 : vector<1x128xf32> to vector<128x128xf32>
    %7 = arith.addf %4, %6 : vector<128x128xf32>
    %cst_8 = arith.constant 0.000000e+00 : f32
    %8 = vector.broadcast %cst_8 : f32 to vector<128x128xf32>
    %9 = arith.maximumf %7, %8 : vector<128x128xf32>
    %c0_9 = arith.constant 0 : index
    %c0_10 = arith.constant 0 : index
    %10 = vector.load %arg4[%c0_9, %c0_10] : memref<128x128xf32, #tpu.memory_space<vmem>>, vector<128x128xf32>
    %cst_11 = arith.constant dense<0.000000e+00> : vector<128x128xf32>
    %11 = tpu.matmul %9, %10, %cst_11 {dimension_numbers = #tpu.dot_dimension_numbers<[1], [0], [0], [1], [0, 0, 1, 1], [], []>} : vector<128x128xf32>, vector<128x128xf32>, vector<128x128xf32> -> vector<128x128xf32>
    %cst_12 = arith.constant dense<0.000000e+00> : vector<128x128xf32>
    %12 = tpu.matmul %0, %11, %cst_12 {dimension_numbers = #tpu.dot_dimension_numbers<[1], [0], [0], [1], [0, 0, 1, 1], [], []>} : vector<128x128xf32>, vector<128x128xf32>, vector<128x128xf32> -> vector<128x128xf32>
    %c0_13 = arith.constant 0 : index
    %c0_14 = arith.constant 0 : index
    %13 = vector.load %arg5[%c0_13, %c0_14] : memref<1x128xf32, #tpu.memory_space<vmem>>, vector<1x128xf32>
    %14 = vector.broadcast %13 : vector<1x128xf32> to vector<128x128xf32>
    %15 = arith.addf %12, %14 : vector<128x128xf32>
    %cst_15 = arith.constant dense<0xFF800000> : vector<128xf32>
    %16 = vector.multi_reduction <maximumf>, %15, %cst_15 [1] : vector<128x128xf32> to vector<128xf32>
    %17 = vector.shape_cast %16 : vector<128xf32> to vector<128x1xf32>
    %18 = vector.broadcast %17 : vector<128x1xf32> to vector<128x128xf32>
    %19 = arith.subf %15, %18 : vector<128x128xf32>
    %20 = math.exp %19 : vector<128x128xf32>
    %cst_16 = arith.constant dense<0.000000e+00> : vector<128xf32>
    %21 = vector.multi_reduction <add>, %20, %cst_16 [1] : vector<128x128xf32> to vector<128xf32>
    %22 = vector.shape_cast %21 : vector<128xf32> to vector<128x1xf32>
    %23 = vector.broadcast %22 : vector<128x1xf32> to vector<128x128xf32>
    %24 = arith.divf %20, %23 : vector<128x128xf32>
    %c0_17 = arith.constant 0 : index
    %c0_18 = arith.constant 0 : index
    %25 = vector.load %arg6[%c0_17, %c0_18] : memref<128x128xf32, #tpu.memory_space<vmem>>, vector<128x128xf32>
    tpu.vector_store %arg6[%c0_17, %c0_18], %24 {strides = array<i32>} : memref<128x128xf32, #tpu.memory_space<vmem>>, vector<128x128xf32>,
    return
  }
}

</mosaic_0001>

<bundles_post_ra>
// kernel: gcn_classification.1
= control target key start
LH: loop header
LB: loop body
LE: loop exit
PB: predicated region body
PF: predicated region fallthrough
CT: control target
= control target key end

     0   :  { %s1712_s2 = inlined_call_operand.vmem [shape: f32[128,128], index: 2, kind: input, shape index: {}]   ;;  %s1713_s0 = inlined_call_operand.vmem [shape: f32[128,128], index: 0, kind: input, shape index: {}]   ;;  %s1714_s1 = inlined_call_operand.vmem [shape: f32[128,128], index: 1, kind: input, shape index: {}]   ;;  %s1715_s4 = inlined_call_operand.vmem [shape: f32[128,128], index: 4, kind: input, shape index: {}]   ;;  %s1716_s3 = inlined_call_operand.vmem [shape: f32[1,128], index: 3, kind: input, shape index: {}]   ;;  %s1717_s5 = inlined_call_operand.vmem [shape: f32[1,128], index: 5, kind: input, shape index: {}]   ;;  %s1718_s6 = inlined_call_operand.vmem [shape: f32[128,128], index: 6, kind: output, shape index: {}]  }
   0x1   :  { %v70_v0 = vld [vmem:[%s1712_s2 + $0x78] sm:$0xff]  ;;  %v69_v1 = vld [vmem:[%s1712_s2 + $0x70] sm:$0xff]  ;;  %v68_v2 = vld [vmem:[%s1712_s2 + $0x68] sm:$0xff] }
   0x2   :  { %991 = vmatprep.subr.mxu0 %v70_v0  ;;  %v67_v3 = vld [vmem:[%s1712_s2 + $0x60] sm:$0xff]  ;;  %v66_v5 = vld [vmem:[%s1712_s2 + $0x58] sm:$0xff]  ;;  %v65_v6 = vld [vmem:[%s1712_s2 + $0x50] sm:$0xff] }
   0x3   :  { %992 = vmatpush3.msra.mxu0 %v70_v0  ;;  %v39_v4 = vld [vmem:[%s1713_s0] sm:$0xff]  ;;  %v64_v7 = vld [vmem:[%s1712_s2 + $0x48] sm:$0xff]  ;;  %v62_v9 = vld [vmem:[%s1712_s2 + $0x38] sm:$0xff] }
   0x4   :  { %993 = vmatprep.subr.mxu0 %v69_v1  ;;  %1023 = vmatprep.mubr.f32.mxu0 %v39_v4  ;;  %v63_v8 = vld [vmem:[%s1712_s2 + $0x40] sm:$0xff]  ;;  %v61_v10 = vld [vmem:[%s1712_s2 + $0x30] sm:$0xff]  ;;  %v60_v11 = vld [vmem:[%s1712_s2 + $0x28] sm:$0xff] }
   0x5   :  { %994 = vmatpush3.msra.mxu0 %v69_v1  ;;  %v59_v12 = vld [vmem:[%s1712_s2 + $0x20] sm:$0xff]  ;;  %v58_v13 = vld [vmem:[%s1712_s2 + $0x18] sm:$0xff]  ;;  %v57_v14 = vld [vmem:[%s1712_s2 + $0x10] sm:$0xff] }
   0x6   :  { %995 = vmatprep.subr.mxu0 %v68_v2  ;;  %v56_v15 = vld [vmem:[%s1712_s2 + $0x8] sm:$0xff]  ;;  %v55_v16 = vld [vmem:[%s1712_s2] sm:$0xff]  ;;  %v41_v18 = vld [vmem:[%s1713_s0 + $0x10] sm:$0xff] }
   0x7   :  { %996 = vmatpush3.msra.mxu0 %v68_v2  ;;  %v40_v17 = vld [vmem:[%s1713_s0 + $0x8] sm:$0xff]  ;;  %v42_v19 = vld [vmem:[%s1713_s0 + $0x18] sm:$0xff]  ;;  %v43_v20 = vld [vmem:[%s1713_s0 + $0x20] sm:$0xff] }
   0x8   :  { %997 = vmatprep.subr.mxu0 %v67_v3  ;;  %v44_v21 = vld [vmem:[%s1713_s0 + $0x28] sm:$0xff]  ;;  %v45_v22 = vld [vmem:[%s1713_s0 + $0x30] sm:$0xff]  ;;  %v46_v23 = vld [vmem:[%s1713_s0 + $0x38] sm:$0xff] }
   0x9   :  { %998 = vmatpush3.msra.mxu0 %v67_v3  ;;  %v47_v24 = vld [vmem:[%s1713_s0 + $0x40] sm:$0xff]  ;;  %v48_v25 = vld [vmem:[%s1713_s0 + $0x48] sm:$0xff]  ;;  %v49_v26 = vld [vmem:[%s1713_s0 + $0x50] sm:$0xff] }
   0xa   :  { %999 = vmatprep.subr.mxu0 %v66_v5  ;;  %v50_v27 = vld [vmem:[%s1713_s0 + $0x58] sm:$0xff]  ;;  %v51_v28 = vld [vmem:[%s1713_s0 + $0x60] sm:$0xff]  ;;  %v52_v29 = vld [vmem:[%s1713_s0 + $0x68] sm:$0xff] }
   0xb   :  { %1000 = vmatpush3.msra.mxu0 %v66_v5  ;;  %v53_v30 = vld [vmem:[%s1713_s0 + $0x70] sm:$0xff]  ;;  %v54_v31 = vld [vmem:[%s1713_s0 + $0x78] sm:$0xff]  ;;  %v1413_v32 = vld [vmem:[%s1714_s1] sm:$0xff] }
   0xc   :  { %1001 = vmatprep.subr.mxu0 %v65_v6  ;;  %1079 = vmatprep.mubr.f32.mxu1 %v1413_v32  ;;  %v399_v33 = vld [vmem:[%s1715_s4 + $0x78] sm:$0xff]  ;;  %v398_v34 = vld [vmem:[%s1715_s4 + $0x70] sm:$0xff]  ;;  %v397_v35 = vld [vmem:[%s1715_s4 + $0x68] sm:$0xff] }
   0xd   :  { %1002 = vmatpush3.msra.mxu0 %v65_v6  ;;  %v396_v36 = vld [vmem:[%s1715_s4 + $0x60] sm:$0xff]  ;;  %v395_v37 = vld [vmem:[%s1715_s4 + $0x58] sm:$0xff]  ;;  %v394_v38 = vld [vmem:[%s1715_s4 + $0x50] sm:$0xff] }
   0xe   :  { %1003 = vmatprep.subr.mxu0 %v64_v7  ;;  %v393_v39 = vld [vmem:[%s1715_s4 + $0x48] sm:$0xff]  ;;  %v392_v40 = vld [vmem:[%s1715_s4 + $0x40] sm:$0xff]  ;;  %v391_v41 = vld [vmem:[%s1715_s4 + $0x38] sm:$0xff] }
   0xf   :  { %1004 = vmatpush3.msra.mxu0 %v64_v7  ;;  %v390_v42 = vld [vmem:[%s1715_s4 + $0x30] sm:$0xff]  ;;  %v389_v43 = vld [vmem:[%s1715_s4 + $0x28] sm:$0xff]  ;;  %v388_v44 = vld [vmem:[%s1715_s4 + $0x20] sm:$0xff] }
  0x10   :  { %1005 = vmatprep.subr.mxu0 %v63_v8  ;;  %v1455_v61 = vld [vmem:[%s1714_s1 + $0x8] sm:$0xff]  ;;  %v1460_v62 = vld [vmem:[%s1714_s1 + $0x10] sm:$0xff]  ;;  %v1467_v63 = vld [vmem:[%s1714_s1 + $0x18] sm:$0xff] }
  0x11   :  { %1006 = vmatpush3.msra.mxu0 %v63_v8  ;;  %v1472_v0 = vld [vmem:[%s1714_s1 + $0x20] sm:$0xff]  ;;  %v1479_v1 = vld [vmem:[%s1714_s1 + $0x28] sm:$0xff]  ;;  %v1484_v2 = vld [vmem:[%s1714_s1 + $0x30] sm:$0xff] }
  0x12   :  { %1007 = vmatprep.subr.mxu0 %v62_v9  ;;  %v1491_v3 = vld [vmem:[%s1714_s1 + $0x38] sm:$0xff]  ;;  %v1496_v4 = vld [vmem:[%s1714_s1 + $0x40] sm:$0xff]  ;;  %v1503_v5 = vld [vmem:[%s1714_s1 + $0x48] sm:$0xff] }
  0x13   :  { %1008 = vmatpush3.msra.mxu0 %v62_v9  ;;  %v1508_v6 = vld [vmem:[%s1714_s1 + $0x50] sm:$0xff]  ;;  %v1515_v7 = vld [vmem:[%s1714_s1 + $0x58] sm:$0xff]  ;;  %v1520_v8 = vld [vmem:[%s1714_s1 + $0x60] sm:$0xff] }
  0x14   :  { %1009 = vmatprep.subr.mxu0 %v61_v10  ;;  %v1527_v9 = vld [vmem:[%s1714_s1 + $0x68] sm:$0xff] }
  0x15   :  { %1010 = vmatpush3.msra.mxu0 %v61_v10  ;;  %v1532_v10 = vld [vmem:[%s1714_s1 + $0x70] sm:$0xff] }
  0x16   :  { %1011 = vmatprep.subr.mxu0 %v60_v11 }
  0x17   :  { %1012 = vmatpush3.msra.mxu0 %v60_v11  ;;  %v1539_v11 = vld [vmem:[%s1714_s1 + $0x78] sm:$0xff] }
  0x18   :  { %1013 = vmatprep.subr.mxu0 %v59_v12 }
  0x19   :  { %1014 = vmatpush3.msra.mxu0 %v59_v12  ;;  %v387_v12 = vld [vmem:[%s1715_s4 + $0x18] sm:$0xff] }
  0x1a   :  { %1015 = vmatprep.subr.mxu0 %v58_v13 }
  0x1b   :  { %1016 = vmatpush3.msra.mxu0 %v58_v13  ;;  %v386_v13 = vld [vmem:[%s1715_s4 + $0x10] sm:$0xff] }
  0x1c   :  { %1017 = vmatprep.subr.mxu0 %v57_v14 }
  0x1d   :  { %1018 = vmatpush3.msra.mxu0 %v57_v14  ;;  %v385_v14 = vld [vmem:[%s1715_s4 + $0x8] sm:$0xff] }
  0x1e   :  { %1019 = vmatprep.subr.mxu0 %v56_v15 }
  0x1f   :  { %1020 = vmatpush3.msra.mxu0 %v56_v15  ;;  %v384_v15 = vld [vmem:[%s1715_s4] sm:$0xff] }
  0x20   :  { %1021 = vmatprep.subr.mxu0 %v55_v16 }
  0x21   :  { %1022 = vmatpush3.msra.mxu0 %v55_v16  ;;  %v861_v16 = vld [vmem:[%s1716_s3] ss:$0 sm:$0xff] }
  0x22   :  { %1024 = vmatmul.mubr.f32.vlgmr.msra.gmra.mxu0 %v40_v17  ;;  %1103 = vmatprep.subr.mxu0 %v399_v33 }
  0x23   :  { %1026 = vmatprep.mubr.f32.mxu0 %v41_v18  ;;  %1104 = vmatpush3.msra.mxu0 %v399_v33 }
  0x24   :  { %1105 = vmatprep.subr.mxu0 %v398_v34 }
  0x25   :  { %1106 = vmatpush3.msra.mxu0 %v398_v34 }
  0x26   :  { %1027 = vmatmul.mubr.f32.gmra.mxu0 %v42_v19  ;;  %1107 = vmatprep.subr.mxu0 %v397_v35 }
  0x27   :  { %1029 = vmatprep.mubr.f32.mxu0 %v43_v20  ;;  %1108 = vmatpush3.msra.mxu0 %v397_v35 }
  0x28   :  { %1109 = vmatprep.subr.mxu0 %v396_v36 }
  0x29   :  { %1110 = vmatpush3.msra.mxu0 %v396_v36 }
  0x2a   :  { %1030 = vmatmul.mubr.f32.gmra.mxu0 %v44_v21  ;;  %1111 = vmatprep.subr.mxu0 %v395_v37 }
  0x2b   :  { %1032 = vmatprep.mubr.f32.mxu0 %v45_v22  ;;  %1112 = vmatpush3.msra.mxu0 %v395_v37 }
  0x2c   :  { %1113 = vmatprep.subr.mxu0 %v394_v38 }
  0x2d   :  { %1114 = vmatpush3.msra.mxu0 %v394_v38 }
  0x2e   :  { %1033 = vmatmul.mubr.f32.gmra.mxu0 %v46_v23  ;;  %1115 = vmatprep.subr.mxu0 %v393_v39 }
  0x2f   :  { %1035 = vmatprep.mubr.f32.mxu0 %v47_v24  ;;  %1116 = vmatpush3.msra.mxu0 %v393_v39 }
  0x30   :  { %1117 = vmatprep.subr.mxu0 %v392_v40 }
  0x31   :  { %1118 = vmatpush3.msra.mxu0 %v392_v40 }
  0x32   :  { %1036 = vmatmul.mubr.f32.gmra.mxu0 %v48_v25  ;;  %1119 = vmatprep.subr.mxu0 %v391_v41 }
  0x33   :  { %1038 = vmatprep.mubr.f32.mxu0 %v49_v26  ;;  %1120 = vmatpush3.msra.mxu0 %v391_v41 }
  0x34   :  { %1121 = vmatprep.subr.mxu0 %v390_v42 }
  0x35   :  { %1122 = vmatpush3.msra.mxu0 %v390_v42 }
  0x36   :  { %1039 = vmatmul.mubr.f32.gmra.mxu0 %v50_v27  ;;  %1123 = vmatprep.subr.mxu0 %v389_v43 }
  0x37   :  { %1041 = vmatprep.mubr.f32.mxu0 %v51_v28  ;;  %1124 = vmatpush3.msra.mxu0 %v389_v43 }
  0x38   :  { %1125 = vmatprep.subr.mxu0 %v388_v44 }
  0x39   :  { %1126 = vmatpush3.msra.mxu0 %v388_v44 }
  0x3a   :  { %1042 = vmatmul.mubr.f32.gmra.mxu0 %v52_v29  ;;  %1127 = vmatprep.subr.mxu0 %v387_v12 }
  0x3b   :  { %1044 = vmatprep.mubr.f32.mxu0 %v53_v30  ;;  %1128 = vmatpush3.msra.mxu0 %v387_v12 }
  0x3c   :  { %1129 = vmatprep.subr.mxu0 %v386_v13 }
  0x3d   :  { %1130 = vmatpush3.msra.mxu0 %v386_v13 }
  0x3e   :  { %1045 = vmatmul.mubr.f32.gmra.mxu0 %v54_v31  ;;  %1131 = vmatprep.subr.mxu0 %v385_v14 }
  0x3f   :  { %1132 = vmatpush3.msra.mxu0 %v385_v14 }
  0x40   :  { %1133 = vmatprep.subr.mxu0 %v384_v15 }
  0x41   :  { %1134 = vmatpush3.msra.mxu0 %v384_v15 }
  0xe2   :  { %v1025_v45 = vpop.f32.mrf.mxu0 }
  0xe4   :  { %v137_v46 = vpop.f32.mrf.mxu0 }
  0xe6   :  { %v1028_v47 = vpop.f32.mrf.mxu0 }
  0xe8   :  { %v147_v48 = vpop.f32.mrf.mxu0 }
  0xea   :  { %v1031_v49 = vpop.f32.mrf.mxu0 }
  0xec   :  { %v157_v50 = vpop.f32.mrf.mxu0 }
  0xee   :  { %v1034_v51 = vpop.f32.mrf.mxu0 }
  0xf0   :  { %v167_v52 = vpop.f32.mrf.mxu0 }
  0xf2   :  { %v1037_v53 = vpop.f32.mrf.mxu0 }
  0xf4   :  { %v177_v54 = vpop.f32.mrf.mxu0 }
  0xf6   :  { %v1040_v55 = vpop.f32.mrf.mxu0 }
  0xf8   :  { %v187_v56 = vpop.f32.mrf.mxu0 }
  0xfa   :  { %v1043_v57 = vpop.f32.mrf.mxu0 }
  0xfc   :  { %v197_v58 = vpop.f32.mrf.mxu0 }
  0xfe   :  { %v1046_v59 = vpop.f32.mrf.mxu0 }
  0xff   :  { %1047 = vmatprep.subr.mxu1 %v1046_v59 }
 0x100   :  { %v207_v60 = vpop.f32.mrf.mxu0  ;;  %1048 = vmatpush3.msra.mxu1 %v1046_v59 }
 0x101   :  { %1049 = vmatprep.subr.mxu1 %v207_v60 }
 0x102   :  { %1050 = vmatpush3.msra.mxu1 %v207_v60 }
 0x103   :  { %1051 = vmatprep.subr.mxu1 %v1043_v57 }
 0x104   :  { %1052 = vmatpush3.msra.mxu1 %v1043_v57 }
 0x105   :  { %1053 = vmatprep.subr.mxu1 %v197_v58 }
 0x106   :  { %1054 = vmatpush3.msra.mxu1 %v197_v58 }
 0x107   :  { %1055 = vmatprep.subr.mxu1 %v1040_v55 }
 0x108   :  { %1056 = vmatpush3.msra.mxu1 %v1040_v55 }
 0x109   :  { %1057 = vmatprep.subr.mxu1 %v187_v56 }
 0x10a   :  { %1058 = vmatpush3.msra.mxu1 %v187_v56 }
 0x10b   :  { %1059 = vmatprep.subr.mxu1 %v1037_v53 }
 0x10c   :  { %1060 = vmatpush3.msra.mxu1 %v1037_v53 }
 0x10d   :  { %1061 = vmatprep.subr.mxu1 %v177_v54 }
 0x10e   :  { %1062 = vmatpush3.msra.mxu1 %v177_v54 }
 0x10f   :  { %1063 = vmatprep.subr.mxu1 %v1034_v51 }
 0x110   :  { %1064 = vmatpush3.msra.mxu1 %v1034_v51 }
 0x111   :  { %1065 = vmatprep.subr.mxu1 %v167_v52 }
 0x112   :  { %1066 = vmatpush3.msra.mxu1 %v167_v52 }
 0x113   :  { %1067 = vmatprep.subr.mxu1 %v1031_v49 }
 0x114   :  { %1068 = vmatpush3.msra.mxu1 %v1031_v49 }
 0x115   :  { %1069 = vmatprep.subr.mxu1 %v157_v50 }
 0x116   :  { %1070 = vmatpush3.msra.mxu1 %v157_v50 }
 0x117   :  { %1071 = vmatprep.subr.mxu1 %v1028_v47 }
 0x118   :  { %1072 = vmatpush3.msra.mxu1 %v1028_v47 }
 0x119   :  { %1073 = vmatprep.subr.mxu1 %v147_v48 }
 0x11a   :  { %1074 = vmatpush3.msra.mxu1 %v147_v48 }
 0x11b   :  { %1075 = vmatprep.subr.mxu1 %v1025_v45 }
 0x11c   :  { %1076 = vmatpush3.msra.mxu1 %v1025_v45 }
 0x11d   :  { %1077 = vmatprep.subr.mxu1 %v137_v46 }
 0x11e   :  { %1078 = vmatpush3.msra.mxu1 %v137_v46 }
 0x11f   :  { %1080 = vmatmul.mubr.f32.vlgmr.msra.gmra.mxu1 %v1455_v61 }
 0x120   :  { %1082 = vmatprep.mubr.f32.mxu1 %v1460_v62 }
 0x123   :  { %1083 = vmatmul.mubr.f32.gmra.mxu1 %v1467_v63 }
 0x124   :  { %1085 = vmatprep.mubr.f32.mxu1 %v1472_v0 }
 0x127   :  { %1086 = vmatmul.mubr.f32.gmra.mxu1 %v1479_v1 }
 0x128   :  { %1088 = vmatprep.mubr.f32.mxu1 %v1484_v2 }
 0x12b   :  { %1089 = vmatmul.mubr.f32.gmra.mxu1 %v1491_v3 }
 0x12c   :  { %1091 = vmatprep.mubr.f32.mxu1 %v1496_v4 }
 0x12f   :  { %1092 = vmatmul.mubr.f32.gmra.mxu1 %v1503_v5 }
 0x130   :  { %1094 = vmatprep.mubr.f32.mxu1 %v1508_v6 }
 0x133   :  { %1095 = vmatmul.mubr.f32.gmra.mxu1 %v1515_v7 }
 0x134   :  { %1097 = vmatprep.mubr.f32.mxu1 %v1520_v8 }
 0x137   :  { %1098 = vmatmul.mubr.f32.gmra.mxu1 %v1527_v9 }
 0x138   :  { %1100 = vmatprep.mubr.f32.mxu1 %v1532_v10 }
 0x13b   :  { %1101 = vmatmul.mubr.f32.gmra.mxu1 %v1539_v11 }
 0x13c   :  { %1191 = vmatprep.mubr.f32.mxu1 %v1413_v32 }
 0x1df   :  { %v1081_v17 = vpop.f32.mrf.mxu1 }
 0x1e0   :  { %v295_v18 = vadd.f32 %v1081_v17, %v861_v16 }
 0x1e1   :  { %v289_v19 = vpop.f32.mrf.mxu1 }
 0x1e2   :  { %v290_v20 = vadd.f32 %v861_v16, %v289_v19  ;;  %v369_v23 = vmax.f32 %v295_v18, 0.0 }
 0x1e3   :  { %v1084_v21 = vpop.f32.mrf.mxu1 }
 0x1e4   :  { %v368_v22 = vmax.f32 %v290_v20, 0.0  ;;  %v305_v24 = vadd.f32 %v1084_v21, %v861_v16 }
 0x1e5   :  { %v299_v25 = vpop.f32.mrf.mxu1 }
 0x1e6   :  { %v300_v26 = vadd.f32 %v861_v16, %v299_v25  ;;  %1135 = vmatprep.mubr.f32.mxu0 %v368_v22  ;;  %v371_v29 = vmax.f32 %v305_v24, 0.0 }
 0x1e7   :  { %v1087_v27 = vpop.f32.mrf.mxu1  ;;  %1136 = vmatmul.mubr.f32.vlgmr.msra.gmra.mxu0 %v369_v23 }
 0x1e8   :  { %v370_v28 = vmax.f32 %v300_v26, 0.0  ;;  %v315_v30 = vadd.f32 %v1087_v27, %v861_v16 }
 0x1e9   :  { %v309_v31 = vpop.f32.mrf.mxu1 }
 0x1ea   :  { %v310_v32 = vadd.f32 %v861_v16, %v309_v31  ;;  %1138 = vmatprep.mubr.f32.mxu0 %v370_v28  ;;  %v373_v35 = vmax.f32 %v315_v30, 0.0 }
 0x1eb   :  { %v1090_v33 = vpop.f32.mrf.mxu1  ;;  %1139 = vmatmul.mubr.f32.gmra.mxu0 %v371_v29 }
 0x1ec   :  { %v372_v34 = vmax.f32 %v310_v32, 0.0  ;;  %v325_v36 = vadd.f32 %v1090_v33, %v861_v16 }
 0x1ed   :  { %v319_v37 = vpop.f32.mrf.mxu1 }
 0x1ee   :  { %v320_v38 = vadd.f32 %v861_v16, %v319_v37  ;;  %1141 = vmatprep.mubr.f32.mxu0 %v372_v34  ;;  %v375_v41 = vmax.f32 %v325_v36, 0.0 }
 0x1ef   :  { %v1093_v39 = vpop.f32.mrf.mxu1  ;;  %1142 = vmatmul.mubr.f32.gmra.mxu0 %v373_v35 }
 0x1f0   :  { %v374_v40 = vmax.f32 %v320_v38, 0.0  ;;  %v335_v42 = vadd.f32 %v1093_v39, %v861_v16 }
 0x1f1   :  { %v329_v43 = vpop.f32.mrf.mxu1 }
 0x1f2   :  { %v330_v44 = vadd.f32 %v861_v16, %v329_v43  ;;  %1144 = vmatprep.mubr.f32.mxu0 %v374_v40  ;;  %v377_v47 = vmax.f32 %v335_v42, 0.0 }
 0x1f3   :  { %v1096_v45 = vpop.f32.mrf.mxu1  ;;  %1145 = vmatmul.mubr.f32.gmra.mxu0 %v375_v41 }
 0x1f4   :  { %v376_v46 = vmax.f32 %v330_v44, 0.0  ;;  %v345_v48 = vadd.f32 %v1096_v45, %v861_v16 }
 0x1f5   :  { %v339_v49 = vpop.f32.mrf.mxu1 }
 0x1f6   :  { %v340_v50 = vadd.f32 %v861_v16, %v339_v49  ;;  %1147 = vmatprep.mubr.f32.mxu0 %v376_v46  ;;  %v379_v53 = vmax.f32 %v345_v48, 0.0 }
 0x1f7   :  { %v1099_v51 = vpop.f32.mrf.mxu1  ;;  %1148 = vmatmul.mubr.f32.gmra.mxu0 %v377_v47 }
 0x1f8   :  { %v378_v52 = vmax.f32 %v340_v50, 0.0  ;;  %v355_v54 = vadd.f32 %v1099_v51, %v861_v16 }
 0x1f9   :  { %v349_v55 = vpop.f32.mrf.mxu1 }
 0x1fa   :  { %v350_v56 = vadd.f32 %v861_v16, %v349_v55  ;;  %1150 = vmatprep.mubr.f32.mxu0 %v378_v52  ;;  %v381_v59 = vmax.f32 %v355_v54, 0.0 }
 0x1fb   :  { %v1102_v57 = vpop.f32.mrf.mxu1  ;;  %1151 = vmatmul.mubr.f32.gmra.mxu0 %v379_v53 }
 0x1fc   :  { %v380_v58 = vmax.f32 %v350_v56, 0.0  ;;  %v365_v60 = vadd.f32 %v1102_v57, %v861_v16 }
 0x1fd   :  { %v359_v12 = vpop.f32.mrf.mxu1 }
 0x1fe   :  { %v360_v13 = vadd.f32 %v861_v16, %v359_v12  ;;  %1153 = vmatprep.mubr.f32.mxu0 %v380_v58  ;;  %v383_v15 = vmax.f32 %v365_v60, 0.0 }
 0x1ff   :  { %1154 = vmatmul.mubr.f32.gmra.mxu0 %v381_v59 }
 0x200   :  { %v382_v14 = vmax.f32 %v360_v13, 0.0 }
 0x202   :  { %1156 = vmatprep.mubr.f32.mxu0 %v382_v14 }
 0x203   :  { %1157 = vmatmul.mubr.f32.gmra.mxu0 %v383_v15 }
 0x2a7   :  { %v1137_v17 = vpop.f32.mrf.mxu0 }
 0x2a9   :  { %v466_v18 = vpop.f32.mrf.mxu0 }
 0x2ab   :  { %v1140_v19 = vpop.f32.mrf.mxu0 }
 0x2ad   :  { %v476_v20 = vpop.f32.mrf.mxu0 }
 0x2af   :  { %v1143_v21 = vpop.f32.mrf.mxu0 }
 0x2b1   :  { %v486_v22 = vpop.f32.mrf.mxu0 }
 0x2b3   :  { %v1146_v23 = vpop.f32.mrf.mxu0 }
 0x2b5   :  { %v496_v24 = vpop.f32.mrf.mxu0 }
 0x2b7   :  { %v1149_v25 = vpop.f32.mrf.mxu0 }
 0x2b9   :  { %v506_v26 = vpop.f32.mrf.mxu0 }
 0x2bb   :  { %v1152_v27 = vpop.f32.mrf.mxu0 }
 0x2bd   :  { %v516_v28 = vpop.f32.mrf.mxu0 }
 0x2bf   :  { %v1155_v29 = vpop.f32.mrf.mxu0 }
 0x2c1   :  { %v526_v16 = vpop.f32.mrf.mxu0 }
 0x2c3   :  { %v1158_v30 = vpop.f32.mrf.mxu0 }
 0x2c4   :  { %1159 = vmatprep.subr.mxu1 %v1158_v30 }
 0x2c5   :  { %v536_v31 = vpop.f32.mrf.mxu0  ;;  %1160 = vmatpush3.msra.mxu1 %v1158_v30 }
 0x2c6   :  { %1161 = vmatprep.subr.mxu1 %v536_v31 }
 0x2c7   :  { %1162 = vmatpush3.msra.mxu1 %v536_v31 }
 0x2c8   :  { %1163 = vmatprep.subr.mxu1 %v1155_v29 }
 0x2c9   :  { %1164 = vmatpush3.msra.mxu1 %v1155_v29 }
 0x2ca   :  { %1165 = vmatprep.subr.mxu1 %v526_v16 }
 0x2cb   :  { %1166 = vmatpush3.msra.mxu1 %v526_v16 }
 0x2cc   :  { %1167 = vmatprep.subr.mxu1 %v1152_v27 }
 0x2cd   :  { %1168 = vmatpush3.msra.mxu1 %v1152_v27 }
 0x2ce   :  { %1169 = vmatprep.subr.mxu1 %v516_v28 }
 0x2cf   :  { %1170 = vmatpush3.msra.mxu1 %v516_v28 }
 0x2d0   :  { %1171 = vmatprep.subr.mxu1 %v1149_v25 }
 0x2d1   :  { %1172 = vmatpush3.msra.mxu1 %v1149_v25 }
 0x2d2   :  { %1173 = vmatprep.subr.mxu1 %v506_v26 }
 0x2d3   :  { %1174 = vmatpush3.msra.mxu1 %v506_v26 }
 0x2d4   :  { %1175 = vmatprep.subr.mxu1 %v1146_v23 }
 0x2d5   :  { %1176 = vmatpush3.msra.mxu1 %v1146_v23 }
 0x2d6   :  { %1177 = vmatprep.subr.mxu1 %v496_v24 }
 0x2d7   :  { %1178 = vmatpush3.msra.mxu1 %v496_v24 }
 0x2d8   :  { %1179 = vmatprep.subr.mxu1 %v1143_v21 }
 0x2d9   :  { %1180 = vmatpush3.msra.mxu1 %v1143_v21 }
 0x2da   :  { %1181 = vmatprep.subr.mxu1 %v486_v22 }
 0x2db   :  { %1182 = vmatpush3.msra.mxu1 %v486_v22 }
 0x2dc   :  { %1183 = vmatprep.subr.mxu1 %v1140_v19 }
 0x2dd   :  { %1184 = vmatpush3.msra.mxu1 %v1140_v19 }
 0x2de   :  { %1185 = vmatprep.subr.mxu1 %v476_v20 }
 0x2df   :  { %1186 = vmatpush3.msra.mxu1 %v476_v20 }
 0x2e0   :  { %1187 = vmatprep.subr.mxu1 %v1137_v17 }
 0x2e1   :  { %1188 = vmatpush3.msra.mxu1 %v1137_v17 }
 0x2e2   :  { %1189 = vmatprep.subr.mxu1 %v466_v18 }
 0x2e3   :  { %1190 = vmatpush3.msra.mxu1 %v466_v18 }
 0x2e4   :  { %1192 = vmatmul.mubr.f32.vlgmr.msra.gmra.mxu1 %v1455_v61  ;;  %v862_v61 = vld [vmem:[%s1717_s5] ss:$0 sm:$0xff] }
 0x2e5   :  { %1194 = vmatprep.mubr.f32.mxu1 %v1460_v62 }
 0x2e8   :  { %1195 = vmatmul.mubr.f32.gmra.mxu1 %v1467_v63 }
 0x2e9   :  { %1197 = vmatprep.mubr.f32.mxu1 %v1472_v0 }
 0x2ec   :  { %1198 = vmatmul.mubr.f32.gmra.mxu1 %v1479_v1 }
 0x2ed   :  { %1200 = vmatprep.mubr.f32.mxu1 %v1484_v2 }
 0x2f0   :  { %1201 = vmatmul.mubr.f32.gmra.mxu1 %v1491_v3 }
 0x2f1   :  { %1203 = vmatprep.mubr.f32.mxu1 %v1496_v4 }
 0x2f4   :  { %1204 = vmatmul.mubr.f32.gmra.mxu1 %v1503_v5 }
 0x2f5   :  { %1206 = vmatprep.mubr.f32.mxu1 %v1508_v6 }
 0x2f8   :  { %1207 = vmatmul.mubr.f32.gmra.mxu1 %v1515_v7 }
 0x2f9   :  { %1209 = vmatprep.mubr.f32.mxu1 %v1520_v8 }
 0x2fc   :  { %1210 = vmatmul.mubr.f32.gmra.mxu1 %v1527_v9 }
 0x2fd   :  { %1212 = vmatprep.mubr.f32.mxu1 %v1532_v10 }
 0x300   :  { %1213 = vmatmul.mubr.f32.gmra.mxu1 %v1539_v11 }
 0x3a4   :  { %v1193_v62 = vpop.f32.mrf.mxu1 }
 0x3a5   :  { %v624_v63 = vadd.f32 %v1193_v62, %v862_v61 }
 0x3a6   :  { %v618_v0 = vpop.f32.mrf.mxu1 }
 0x3a7   :  { %699 = vmax.xlane.f32.xlu0 %v624_v63  ;;  %v619_v2 = vadd.f32 %v862_v61, %v618_v0 }
 0x3a8   :  { %v1196_v1 = vpop.f32.mrf.mxu1 }
 0x3a9   :  { %v634_v3 = vadd.f32 %v1196_v1, %v862_v61 }
 0x3aa   :  { %v628_v4 = vpop.f32.mrf.mxu1 }
 0x3ab   :  { %703 = vmax.xlane.f32.xlu1 %v634_v3  ;;  %697 = vmax.xlane.f32.xlu0 %v619_v2  ;;  %v629_v6 = vadd.f32 %v862_v61, %v628_v4 }
 0x3ac   :  { %v1199_v5 = vpop.f32.mrf.mxu1 }
 0x3ad   :  { %v644_v10 = vadd.f32 %v1199_v5, %v862_v61 }
 0x3ae   :  { %v638_v7 = vpop.f32.mrf.mxu1 }
 0x3af   :  { %v639_v8 = vadd.f32 %v862_v61, %v638_v7  ;;  %701 = vmax.xlane.f32.xlu1 %v629_v6 }
 0x3b0   :  { %v1202_v9 = vpop.f32.mrf.mxu1 }
 0x3b1   :  { %705 = vmax.xlane.f32.xlu0 %v639_v8  ;;  %v654_v34 = vadd.f32 %v1202_v9, %v862_v61 }
 0x3b2   :  { %v648_v11 = vpop.f32.mrf.mxu1 }
 0x3b3   :  { %v649_v32 = vadd.f32 %v862_v61, %v648_v11  ;;  %707 = vmax.xlane.f32.xlu1 %v644_v10 }
 0x3b4   :  { %v1205_v33 = vpop.f32.mrf.mxu1 }
 0x3b5   :  { %709 = vmax.xlane.f32.xlu0 %v649_v32  ;;  %v664_v38 = vadd.f32 %v1205_v33, %v862_v61 }
 0x3b6   :  { %v658_v35 = vpop.f32.mrf.mxu1 }
 0x3b7   :  { %v659_v36 = vadd.f32 %v862_v61, %v658_v35  ;;  %711 = vmax.xlane.f32.xlu1 %v654_v34 }
 0x3b8   :  { %v1208_v37 = vpop.f32.mrf.mxu1 }
 0x3b9   :  { %713 = vmax.xlane.f32.xlu0 %v659_v36  ;;  %v1578_v42 = vadd.f32 %v1208_v37, %v862_v61 }
 0x3ba   :  { %v668_v39 = vpop.f32.mrf.mxu1 }
 0x3bb   :  { %v1576_v40 = vadd.f32 %v862_v61, %v668_v39  ;;  %715 = vmax.xlane.f32.xlu1 %v664_v38 }
 0x3bc   :  { %v1211_v41 = vpop.f32.mrf.mxu1 }
 0x3bd   :  { %717 = vmax.xlane.f32.xlu0 %v1576_v40  ;;  %v1584_v46 = vadd.f32 %v1211_v41, %v862_v61 }
 0x3be   :  { %v678_v43 = vpop.f32.mrf.mxu1 }
 0x3bf   :  { %v1581_v44 = vadd.f32 %v862_v61, %v678_v43  ;;  %719 = vmax.xlane.f32.xlu1 %v1578_v42 }
 0x3c0   :  { %v1214_v45 = vpop.f32.mrf.mxu1 }
 0x3c1   :  { %721 = vmax.xlane.f32.xlu0 %v1581_v44  ;;  %v1590_v49 = vadd.f32 %v1214_v45, %v862_v61 }
 0x3c2   :  { %v688_v47 = vpop.f32.mrf.mxu1 }
 0x3c3   :  { %v1587_v48 = vadd.f32 %v862_v61, %v688_v47  ;;  %723 = vmax.xlane.f32.xlu1 %v1584_v46 }
 0x3c5   :  { %725 = vmax.xlane.f32.xlu0 %v1587_v48 }
 0x3c7   :  { %727 = vmax.xlane.f32.xlu1 %v1590_v49 }
 0x430   :  { %v700_v50 = vpop.xlane.xlu0 %699 }
 0x431   :  { %v730_v51 = vsub.f32 %v624_v63, %v700_v50 }
 0x433   :  { %v747_v52 = vmul.f32 1.442695, %v730_v51 }
 0x434   :  { %v704_v53 = vpop.xlane.xlu1 %703  ;;  %v698_v54 = vpop.xlane.xlu0 %697 }
 0x435   :  { %1215 = vpow2.f32 %v747_v52  ;;  %v732_v55 = vsub.f32 %v634_v3, %v704_v53  ;;  %v729_v56 = vsub.f32 %v619_v2, %v698_v54 }
 0x437   :  { %v751_v57 = vmul.f32 1.442695, %v732_v55  ;;  %v745_v58 = vmul.f32 1.442695, %v729_v56 }
 0x438   :  { %v702_v59 = vpop.xlane.xlu1 %701 }
 0x439   :  { %1217 = vpow2.f32 %v751_v57  ;;  %v731_v60 = vsub.f32 %v629_v6, %v702_v59 }
 0x43a   :  { %1219 = vpow2.f32 %v745_v58  ;;  %v706_v12 = vpop.xlane.xlu0 %705 }
 0x43b   :  { %v749_v13 = vmul.f32 1.442695, %v731_v60  ;;  %v733_v14 = vsub.f32 %v639_v8, %v706_v12 }
 0x43c   :  { %v708_v15 = vpop.xlane.xlu1 %707 }
 0x43d   :  { %1221 = vpow2.f32 %v749_v13  ;;  %v734_v17 = vsub.f32 %v644_v10, %v708_v15  ;;  %v753_v18 = vmul.f32 1.442695, %v733_v14 }
 0x43e   :  { %v710_v19 = vpop.xlane.xlu0 %709 }
 0x43f   :  { %v755_v20 = vmul.f32 1.442695, %v734_v17  ;;  %v735_v21 = vsub.f32 %v649_v32, %v710_v19 }
 0x440   :  { %v712_v22 = vpop.xlane.xlu1 %711 }
 0x441   :  { %1223 = vpow2.f32 %v755_v20  ;;  %v736_v23 = vsub.f32 %v654_v34, %v712_v22  ;;  %v757_v25 = vmul.f32 1.442695, %v735_v21 }
 0x442   :  { %v1594_v24 = vpop.eup %1215  ;;  %1225 = vpow2.f32 %v753_v18  ;;  %v714_v26 = vpop.xlane.xlu0 %713 }
 0x443   :  { %v759_v27 = vmul.f32 1.442695, %v736_v23  ;;  %v737_v28 = vsub.f32 %v659_v36, %v714_v26  ;;  %779 = vadd.xlane.f32.xlu1 %v1594_v24 }
 0x444   :  { %v716_v29 = vpop.xlane.xlu1 %715 }
 0x445   :  { %1227 = vpow2.f32 %v759_v27  ;;  %v738_v16 = vsub.f32 %v664_v38, %v716_v29  ;;  %v761_v31 = vmul.f32 1.442695, %v737_v28 }
 0x446   :  { %v1597_v30 = vpop.eup %1217  ;;  %1229 = vpow2.f32 %v757_v25  ;;  %v718_v61 = vpop.xlane.xlu0 %717 }
 0x447   :  { %v1599_v62 = vpop.eup %1219  ;;  %v763_v63 = vmul.f32 1.442695, %v738_v16  ;;  %v739_v0 = vsub.f32 %v1576_v40, %v718_v61  ;;  %783 = vadd.xlane.f32.xlu1 %v1597_v30 }
 0x448   :  { %777 = vadd.xlane.f32.xlu0 %v1599_v62  ;;  %v720_v1 = vpop.xlane.xlu1 %719 }
 0x449   :  { %1231 = vpow2.f32 %v763_v63  ;;  %v740_v2 = vsub.f32 %v1578_v42, %v720_v1  ;;  %v765_v4 = vmul.f32 1.442695, %v739_v0 }
 0x44a   :  { %v1605_v3 = vpop.eup %1221  ;;  %1233 = vpow2.f32 %v761_v31  ;;  %v722_v5 = vpop.xlane.xlu0 %721 }
 0x44b   :  { %v767_v6 = vmul.f32 1.442695, %v740_v2  ;;  %v741_v7 = vsub.f32 %v1581_v44, %v722_v5 }
 0x44c   :  { %781 = vadd.xlane.f32.xlu0 %v1605_v3  ;;  %v724_v8 = vpop.xlane.xlu1 %723 }
 0x44d   :  { %1235 = vpow2.f32 %v767_v6  ;;  %v742_v9 = vsub.f32 %v1584_v46, %v724_v8  ;;  %v769_v11 = vmul.f32 1.442695, %v741_v7 }
 0x44e   :  { %v1610_v10 = vpop.eup %1223  ;;  %1237 = vpow2.f32 %v765_v4  ;;  %v726_v32 = vpop.xlane.xlu0 %725 }
 0x44f   :  { %v1612_v33 = vpop.eup %1225  ;;  %v771_v34 = vmul.f32 1.442695, %v742_v9  ;;  %v743_v35 = vsub.f32 %v1587_v48, %v726_v32  ;;  %787 = vadd.xlane.f32.xlu1 %v1610_v10 }
 0x450   :  { %785 = vadd.xlane.f32.xlu0 %v1612_v33  ;;  %v728_v36 = vpop.xlane.xlu1 %727 }
 0x451   :  { %1239 = vpow2.f32 %v771_v34  ;;  %v744_v37 = vsub.f32 %v1590_v49, %v728_v36  ;;  %v773_v39 = vmul.f32 1.442695, %v743_v35 }
 0x452   :  { %v1618_v38 = vpop.eup %1227  ;;  %1241 = vpow2.f32 %v769_v11 }
 0x453   :  { %v1620_v40 = vpop.eup %1229  ;;  %v775_v41 = vmul.f32 1.442695, %v744_v37  ;;  %791 = vadd.xlane.f32.xlu1 %v1618_v38 }
 0x454   :  { %789 = vadd.xlane.f32.xlu0 %v1620_v40 }
 0x455   :  { %1243 = vpow2.f32 %v775_v41 }
 0x456   :  { %v1624_v42 = vpop.eup %1231  ;;  %1245 = vpow2.f32 %v773_v39 }
 0x457   :  { %v1626_v43 = vpop.eup %1233  ;;  %795 = vadd.xlane.f32.xlu1 %v1624_v42 }
 0x458   :  { %793 = vadd.xlane.f32.xlu0 %v1626_v43 }
 0x45a   :  { %v1630_v44 = vpop.eup %1235 }
 0x45b   :  { %v1632_v45 = vpop.eup %1237  ;;  %799 = vadd.xlane.f32.xlu1 %v1630_v44 }
 0x45c   :  { %797 = vadd.xlane.f32.xlu0 %v1632_v45 }
 0x45e   :  { %v1636_v46 = vpop.eup %1239 }
 0x45f   :  { %v1638_v47 = vpop.eup %1241  ;;  %803 = vadd.xlane.f32.xlu1 %v1636_v46 }
 0x460   :  { %801 = vadd.xlane.f32.xlu0 %v1638_v47 }
 0x462   :  { %v1642_v48 = vpop.eup %1243 }
 0x463   :  { %v1644_v49 = vpop.eup %1245  ;;  %807 = vadd.xlane.f32.xlu1 %v1642_v48 }
 0x464   :  { %805 = vadd.xlane.f32.xlu0 %v1644_v49 }
 0x4cc   :  { %v780_v50 = vpop.xlane.xlu1 %779 }
 0x4cd   :  { %1247 = vrcp.f32 %v780_v50 }
 0x4d0   :  { %v784_v51 = vpop.xlane.xlu1 %783 }
 0x4d1   :  { %1249 = vrcp.f32 %v784_v51  ;;  %v778_v52 = vpop.xlane.xlu0 %777 }
 0x4d2   :  { %1251 = vrcp.f32 %v778_v52 }
 0x4d5   :  { %v782_v53 = vpop.xlane.xlu0 %781 }
 0x4d6   :  { %1253 = vrcp.f32 %v782_v53 }
 0x4d8   :  { %v788_v54 = vpop.xlane.xlu1 %787 }
 0x4d9   :  { %1255 = vrcp.f32 %v788_v54  ;;  %v786_v55 = vpop.xlane.xlu0 %785 }
 0x4da   :  { %v1248_v56 = vpop.eup %1247  ;;  %1257 = vrcp.f32 %v786_v55 }
 0x4db   :  { %v812_v57 = vmul.f32 %v1248_v56, %v1594_v24 }
 0x4dc   :  { %v792_v58 = vpop.xlane.xlu1 %791 }
 0x4dd   :  { %842 = vst [vmem:[%s1718_s6 + $0x8] sm:$0xff] %v812_v57  ;;  %1259 = vrcp.f32 %v792_v58  ;;  %v790_v59 = vpop.xlane.xlu0 %789 }
 0x4de   :  { %v1250_v60 = vpop.eup %1249  ;;  %1261 = vrcp.f32 %v790_v59 }
 0x4df   :  { %v1252_v12 = vpop.eup %1251  ;;  %v816_v13 = vmul.f32 %v1250_v60, %v1597_v30 }
 0x4e0   :  { %v810_v14 = vmul.f32 %v1252_v12, %v1599_v62  ;;  %v796_v15 = vpop.xlane.xlu1 %795 }
 0x4e1   :  { %844 = vst [vmem:[%s1718_s6 + $0x18] sm:$0xff] %v816_v13  ;;  %1263 = vrcp.f32 %v796_v15  ;;  %v794_v17 = vpop.xlane.xlu0 %793 }
 0x4e2   :  { %841 = vst [vmem:[%s1718_s6] sm:$0xff] %v810_v14  ;;  %1265 = vrcp.f32 %v794_v17 }
 0x4e3   :  { %v1254_v18 = vpop.eup %1253 }
 0x4e4   :  { %v814_v19 = vmul.f32 %v1254_v18, %v1605_v3  ;;  %v800_v20 = vpop.xlane.xlu1 %799 }
 0x4e5   :  { %1267 = vrcp.f32 %v800_v20  ;;  %v798_v21 = vpop.xlane.xlu0 %797 }
 0x4e6   :  { %v1256_v22 = vpop.eup %1255  ;;  %843 = vst [vmem:[%s1718_s6 + $0x10] sm:$0xff] %v814_v19  ;;  %1269 = vrcp.f32 %v798_v21 }
 0x4e7   :  { %v1258_v23 = vpop.eup %1257  ;;  %v820_v24 = vmul.f32 %v1256_v22, %v1610_v10 }
 0x4e8   :  { %v818_v25 = vmul.f32 %v1258_v23, %v1612_v33  ;;  %v804_v26 = vpop.xlane.xlu1 %803 }
 0x4e9   :  { %846 = vst [vmem:[%s1718_s6 + $0x28] sm:$0xff] %v820_v24  ;;  %1271 = vrcp.f32 %v804_v26  ;;  %v802_v27 = vpop.xlane.xlu0 %801 }
 0x4ea   :  { %v1260_v28 = vpop.eup %1259  ;;  %845 = vst [vmem:[%s1718_s6 + $0x20] sm:$0xff] %v818_v25  ;;  %1273 = vrcp.f32 %v802_v27 }
 0x4eb   :  { %v1262_v29 = vpop.eup %1261  ;;  %v824_v16 = vmul.f32 %v1260_v28, %v1618_v38 }
 0x4ec   :  { %v822_v30 = vmul.f32 %v1262_v29, %v1620_v40  ;;  %v808_v31 = vpop.xlane.xlu1 %807 }
 0x4ed   :  { %848 = vst [vmem:[%s1718_s6 + $0x38] sm:$0xff] %v824_v16  ;;  %1275 = vrcp.f32 %v808_v31  ;;  %v806_v61 = vpop.xlane.xlu0 %805 }
 0x4ee   :  { %v1264_v62 = vpop.eup %1263  ;;  %847 = vst [vmem:[%s1718_s6 + $0x30] sm:$0xff] %v822_v30  ;;  %1277 = vrcp.f32 %v806_v61 }
 0x4ef   :  { %v1266_v63 = vpop.eup %1265  ;;  %v828_v0 = vmul.f32 %v1264_v62, %v1624_v42 }
 0x4f0   :  { %v826_v1 = vmul.f32 %v1266_v63, %v1626_v43 }
 0x4f1   :  { %850 = vst [vmem:[%s1718_s6 + $0x48] sm:$0xff] %v828_v0 }
 0x4f2   :  { %v1268_v2 = vpop.eup %1267  ;;  %849 = vst [vmem:[%s1718_s6 + $0x40] sm:$0xff] %v826_v1 }
 0x4f3   :  { %v1270_v3 = vpop.eup %1269  ;;  %v832_v4 = vmul.f32 %v1268_v2, %v1630_v44 }
 0x4f4   :  { %v830_v5 = vmul.f32 %v1270_v3, %v1632_v45 }
 0x4f5   :  { %852 = vst [vmem:[%s1718_s6 + $0x58] sm:$0xff] %v832_v4 }
 0x4f6   :  { %v1272_v6 = vpop.eup %1271  ;;  %851 = vst [vmem:[%s1718_s6 + $0x50] sm:$0xff] %v830_v5 }
 0x4f7   :  { %v1274_v7 = vpop.eup %1273  ;;  %v836_v8 = vmul.f32 %v1272_v6, %v1636_v46 }
 0x4f8   :  { %v834_v9 = vmul.f32 %v1274_v7, %v1638_v47 }
 0x4f9   :  { %854 = vst [vmem:[%s1718_s6 + $0x68] sm:$0xff] %v836_v8 }
 0x4fa   :  { %v1276_v10 = vpop.eup %1275  ;;  %853 = vst [vmem:[%s1718_s6 + $0x60] sm:$0xff] %v834_v9 }
 0x4fb   :  { %v1278_v11 = vpop.eup %1277  ;;  %v840_v32 = vmul.f32 %v1276_v10, %v1642_v48 }
 0x4fc   :  { %v838_v33 = vmul.f32 %v1278_v11, %v1644_v49 }
 0x4fd   :  { %856 = vst [vmem:[%s1718_s6 + $0x78] sm:$0xff] %v840_v32 }
 0x4fe   :  { %855 = vst [vmem:[%s1718_s6 + $0x70] sm:$0xff] %v838_v33 }

</bundles_post_ra>
